<compile_context>
chip_gen: v6e
topology: v6e:2x2x1
jax: 0.10.0
libtpu: 0.0.40
codegen_flags: <defaults>
</compile_context>

<pallas_src>
import math
from functools import partial

import jax
import jax.numpy as jnp
from jax.experimental import pallas as pl
from jax.experimental.pallas import tpu as pltpu

# ---------------------------------------------------------------------------
# Packed-parameter slab layout: one (856, 128) f32 array.  Every row offset is
# a multiple of 8 (f32 sublane tile) so each in-kernel slice is an aligned,
# zero-cost view.
# ---------------------------------------------------------------------------
_R_W1 = 0        # (256, 128)  fc1
_R_W1A_X = 256   # (128, 128)  fc1a rows fed by fc1 activations
_R_W1A_W = 384   # ( 36, 128)  fc1a rows fed by the runtime `w` features
_R_W1B = 424     # (128, 128)  fc1b
_R_W1C = 552     # (128,  64)  fc1c rows fed by fc1b activations
_R_W2 = 680      # ( 64,  64)  fc2
_R_W3 = 744      # ( 64,  32)  fc3
_R_W4 = 808      # ( 32,  16)  fc4
_R_W5 = 840      # (  1,  16)  fc5 weight as a row vector
_R_BIAS = 848    # (  8, 128)  biases, one per row
_TOTAL_ROWS = 856

_FLOPS_PER_SAMPLE = 2 * (256 * 128 + 128 * 128 + 36 * 128 + 128 * 128
                         + 128 * 64 + 64 * 64 + 64 * 32 + 32 * 16 + 16)


def _round_up(n, m):
    return ((n + m - 1) // m) * m


def _pairwise_mlp_kernel(x_ref, w_ref, p_ref, out_ref):
    """Fused batched MLP: fc1..fc5 + ReLUs + sigmoid, weights VMEM-resident."""
    f32 = jnp.float32
    x = x_ref[...]                         # (TB, 256)
    w = w_ref[...]                         # (TB, 36)
    bias = p_ref[_R_BIAS:_R_BIAS + 8, :]   # (8, 128), one aligned load

    def brow(i, n):
        return bias[i:i + 1, :n]           # (1, n) value slice, broadcasts over B

    # fc1 + relu
    h = jnp.dot(x, p_ref[_R_W1:_R_W1 + 256, :],
                preferred_element_type=f32) + brow(0, 128)
    h = jnp.maximum(h, 0.0)

    # cat([h, w]) @ W1a  ==  h @ W1a[:128] + w @ W1a[128:]   (K=36 remainder
    # on the second dot is masked by Mosaic on the MXU).
    h = (jnp.dot(h, p_ref[_R_W1A_X:_R_W1A_X + 128, :], preferred_element_type=f32)
         + jnp.dot(w, p_ref[_R_W1A_W:_R_W1A_W + 36, :], preferred_element_type=f32)
         + brow(1, 128))
    h = jnp.maximum(h, 0.0)

    # fc1b + relu
    h = jnp.dot(h, p_ref[_R_W1B:_R_W1B + 128, :],
                preferred_element_type=f32) + brow(2, 128)
    h = jnp.maximum(h, 0.0)

    # fc1c + relu  (game-embedding branch folded into the bias row)
    h = jnp.dot(h, p_ref[_R_W1C:_R_W1C + 128, 0:64],
                preferred_element_type=f32) + brow(3, 64)
    h = jnp.maximum(h, 0.0)

    # fc2 .. fc4 (+ relu)
    h = jnp.maximum(
        jnp.dot(h, p_ref[_R_W2:_R_W2 + 64, 0:64],
                preferred_element_type=f32) + brow(4, 64), 0.0)
    h = jnp.maximum(
        jnp.dot(h, p_ref[_R_W3:_R_W3 + 64, 0:32],
                preferred_element_type=f32) + brow(5, 32), 0.0)
    h = jnp.maximum(
        jnp.dot(h, p_ref[_R_W4:_R_W4 + 32, 0:16],
                preferred_element_type=f32) + brow(6, 16), 0.0)

    # fc5: (B,16)·(16,1) as elementwise multiply (VPU) + lane reduce (XLU) —
    # avoids a 1-wide MXU result tile.
    w5 = p_ref[_R_W5:_R_W5 + 1, 0:16]                      # (1, 16)
    logit = jnp.sum(h * w5, axis=-1, keepdims=True) + bias[7:8, 0:1]

    # sigmoid: exp on the EUP, add/div on the VPU.
    out_ref[...] = 1.0 / (1.0 + jnp.exp(-logit))


@partial(jax.jit, static_argnames=("block_b",))
def pairwise_forward_batched(x, w, slab, *, block_b=512):
    """x: (B, 256) f32, w: (B, 36) f32 -> (B, 1) sigmoid probabilities."""
    x = x.astype(jnp.float32)
    w = w.astype(jnp.float32)
    B = x.shape[0]

    tb = min(block_b, _round_up(B, 8))       # batch tile (multiple of 8)
    bp = _round_up(B, tb)                     # padded batch (multiple of tb)
    if bp != B:
        x = jnp.pad(x, ((0, bp - B), (0, 0)))
        w = jnp.pad(w, ((0, bp - B), (0, 0)))

    cost = pl.CostEstimate(
        flops=_FLOPS_PER_SAMPLE * bp,
        transcendentals=bp,
        bytes_accessed=int(slab.size * 4 + x.size * 4 + w.size * 4 + bp * 4),
    )

    out = pl.pallas_call(
        _pairwise_mlp_kernel,
        out_shape=jax.ShapeDtypeStruct((bp, 1), jnp.float32),
        grid=(bp // tb,),
        in_specs=[
            pl.BlockSpec((tb, 256), lambda b: (b, 0)),            # x streams
            pl.BlockSpec((tb, 36), lambda b: (b, 0)),             # w streams
            pl.BlockSpec((_TOTAL_ROWS, 128), lambda b: (0, 0)),   # weights resident
        ],
        out_specs=pl.BlockSpec((tb, 1), lambda b: (b, 0)),
        compiler_params=pltpu.CompilerParams(
            dimension_semantics=("parallel",)),
        cost_estimate=cost,
    )(x, w, slab)
    return out[:B]


class EmbeddingModule:
    """JAX port of the PyTorch EmbeddingModule (holds a (1, n) parameter)."""

    def __init__(self, n=36, *, key):
        self.embedding = jax.random.normal(key, (1, n), dtype=jnp.float32)

    def forward(self):
        # Matches PyTorch exactly: empty body, returns None.
        return


class PairwiseIsActionTakenBayesian:
    """JAX/Pallas port of the PyTorch PairwiseIsActionTakenBayesian module."""

    def __init__(self, key):
        ks = jax.random.split(key, 18)

        def linear(kw, kb, fan_in, fan_out):
            # nn.Linear-style init: U(-1/sqrt(fan_in), 1/sqrt(fan_in)).
            bound = 1.0 / math.sqrt(fan_in)
            wgt = jax.random.uniform(kw, (fan_in, fan_out), jnp.float32,
                                     minval=-bound, maxval=bound)
            b = jax.random.uniform(kb, (1, fan_out), jnp.float32,
                                   minval=-bound, maxval=bound)
            return wgt, b

        self.W1, self.b1 = linear(ks[0], ks[1], 256, 128)
        self.W1a, self.b1a = linear(ks[2], ks[3], 164, 128)
        self.W1b, self.b1b = linear(ks[4], ks[5], 128, 128)
        self.W1c, self.b1c = linear(ks[6], ks[7], 140, 64)
        self.W2, self.b2 = linear(ks[8], ks[9], 64, 64)
        self.W3, self.b3 = linear(ks[10], ks[11], 64, 32)
        self.W4, self.b4 = linear(ks[12], ks[13], 32, 16)
        self.W5, self.b5 = linear(ks[14], ks[15], 16, 1)
        # Mirrors the PyTorch ModuleLists; action embedding is unused in forward.
        self.action_EmbeddingList = [EmbeddingModule(36, key=ks[16])]
        self.EmbeddingList = [EmbeddingModule(12, key=ks[17])]

        self._slab = self._pack_params()

    def _pack_params(self):
        """Pack every weight & bias into one (856,128) f32 slab (single DMA)."""
        slab = jnp.zeros((_TOTAL_ROWS, 128), jnp.float32)
        slab = slab.at[_R_W1:_R_W1 + 256, :].set(self.W1)
        slab = slab.at[_R_W1A_X:_R_W1A_X + 128, :].set(self.W1a[:128])
        slab = slab.at[_R_W1A_W:_R_W1A_W + 36, :].set(self.W1a[128:])
        slab = slab.at[_R_W1B:_R_W1B + 128, :].set(self.W1b)
        slab = slab.at[_R_W1C:_R_W1C + 128, :64].set(self.W1c[:128])
        slab = slab.at[_R_W2:_R_W2 + 64, :64].set(self.W2)
        slab = slab.at[_R_W3:_R_W3 + 64, :32].set(self.W3)
        slab = slab.at[_R_W4:_R_W4 + 32, :16].set(self.W4)
        slab = slab.at[_R_W5, :16].set(self.W5[:, 0])
        # Fold the constant game-embedding branch of fc1c into its bias:
        # cat([h, emb]) @ W1c + b1c == h @ W1c[:128] + (emb @ W1c[128:] + b1c).
        emb = self.EmbeddingList[0].embedding                       # (1, 12)
        b1c_eff = (emb @ self.W1c[128:] + self.b1c).reshape(64)
        slab = slab.at[_R_BIAS + 0, :128].set(self.b1.reshape(128))
        slab = slab.at[_R_BIAS + 1, :128].set(self.b1a.reshape(128))
        slab = slab.at[_R_BIAS + 2, :128].set(self.b1b.reshape(128))
        slab = slab.at[_R_BIAS + 3, :64].set(b1c_eff)
        slab = slab.at[_R_BIAS + 4, :64].set(self.b2.reshape(64))
        slab = slab.at[_R_BIAS + 5, :32].set(self.b3.reshape(32))
        slab = slab.at[_R_BIAS + 6, :16].set(self.b4.reshape(16))
        slab = slab.at[_R_BIAS + 7, :1].set(self.b5.reshape(1))
        return slab

    def forward(self, x, w):
        """PyTorch-parity single-pair path: x (256,), w (36,) -> (1,)."""
        out = pairwise_forward_batched(x.reshape(1, 256), w.reshape(1, 36),
                                       self._slab)
        return out.reshape(1)

    def forward_batch(self, x, w):
        """Batched path: x (B,256), w (B,36) -> (B,1)."""
        return pairwise_forward_batched(x, w, self._slab)

    __call__ = forward


def forward_reference(m: PairwiseIsActionTakenBayesian, x, w):
    """Pure-JAX reference mirroring the PyTorch forward line-by-line."""
    h = jnp.maximum(x @ m.W1 + m.b1[0], 0.0)
    h = jnp.concatenate([h, w], axis=0)
    h = jnp.maximum(h @ m.W1a + m.b1a[0], 0.0)
    h = jnp.maximum(h @ m.W1b + m.b1b[0], 0.0)
    w_game = m.EmbeddingList[0].embedding
    h = jnp.concatenate([h, w_game.reshape(12)], axis=0)
    h = jnp.maximum(h @ m.W1c + m.b1c[0], 0.0)
    h = jnp.maximum(h @ m.W2 + m.b2[0], 0.0)
    h = jnp.maximum(h @ m.W3 + m.b3[0], 0.0)
    h = jnp.maximum(h @ m.W4 + m.b4[0], 0.0)
    logit = h @ m.W5 + m.b5[0]
    return 1.0 / (1.0 + jnp.exp(-logit))


if __name__ == "__main__":
    key = jax.random.PRNGKey(0)
    k_mod, k_x, k_w = jax.random.split(key, 3)

    module = PairwiseIsActionTakenBayesian(k_mod)

    # EmbeddingModule.forward keeps its PyTorch semantics (returns None).
    assert module.EmbeddingList[0].forward() is None

    # --- Single pair (matches the PyTorch 1-D forward exactly) -------------
    x1 = jax.random.normal(k_x, (256,), dtype=jnp.float32)
    w1 = jax.random.normal(k_w, (36,), dtype=jnp.float32)
    out1 = jax.block_until_ready(module(x1, w1))
    ref1 = forward_reference(module, x1, w1)
    assert out1.shape == (1,) and out1.dtype == jnp.float32
    assert bool(jnp.allclose(out1, ref1, atol=1e-5, rtol=1e-5)), (out1, ref1)

    # --- Small batch through the batched kernel ----------------------------
    B = 16
    xb = jax.random.normal(jax.random.fold_in(k_x, 1), (B, 256), jnp.float32)
    wb = jax.random.normal(jax.random.fold_in(k_w, 1), (B, 36), jnp.float32)
    outb = jax.block_until_ready(module.forward_batch(xb, wb))
    refb = jax.vmap(lambda xx, ww: forward_reference(module, xx, ww))(xb, wb)
    assert outb.shape == (B, 1) and outb.dtype == jnp.float32
    assert bool(jnp.allclose(outb.reshape(B), refb.reshape(B),
                             atol=1e-5, rtol=1e-5)), (outb, refb)

    print("KERNEL_OK")
</pallas_src>

<mosaic_0001>
module attributes {stable_mosaic.version = 11 : i64} {
  func.func @_pairwise_mlp_kernel(%arg0: i32, %arg1: memref<8x256xf32, #tpu.memory_space<vmem>>, %arg2: memref<8x36xf32, #tpu.memory_space<vmem>>, %arg3: memref<856x128xf32, #tpu.memory_space<vmem>>, %arg4: memref<8x1xf32, #tpu.memory_space<vmem>>) attributes {dimension_semantics = [#tpu.dimension_semantics<parallel>], iteration_bounds = array<i64: 1>, scalar_prefetch = 0 : i64, scratch_operands = 0 : i64, tpu.core_type = #tpu.core_type<tc>, window_params = [{transform_indices = @transform_0, window_bounds = array<i64: 8, 256>}, {transform_indices = @transform_1, window_bounds = array<i64: 8, 36>}, {pipeline_mode = #tpu.pipeline_mode<synchronous>, transform_indices = @transform_2, window_bounds = array<i64: 856, 128>}, {transform_indices = @transform_3, window_bounds = array<i64: 8, 1>}]} {
    %c0 = arith.constant 0 : index
    %c0_0 = arith.constant 0 : index
    %0 = vector.load %arg1[%c0, %c0_0] : memref<8x256xf32, #tpu.memory_space<vmem>>, vector<8x256xf32>
    %c0_1 = arith.constant 0 : index
    %c0_2 = arith.constant 0 : index
    %1 = vector.load %arg2[%c0_1, %c0_2] : memref<8x36xf32, #tpu.memory_space<vmem>>, vector<8x36xf32>
    %c848 = arith.constant 848 : index
    %c0_3 = arith.constant 0 : index
    %2 = vector.load %arg3[%c848, %c0_3] : memref<856x128xf32, #tpu.memory_space<vmem>>, vector<8x128xf32>
    %c0_4 = arith.constant 0 : index
    %c0_5 = arith.constant 0 : index
    %3 = vector.load %arg3[%c0_4, %c0_5] : memref<856x128xf32, #tpu.memory_space<vmem>>, vector<256x128xf32>
    %cst = arith.constant dense<0.000000e+00> : vector<8x128xf32>
    %4 = tpu.matmul %0, %3, %cst {dimension_numbers = #tpu.dot_dimension_numbers<[1], [0], [0], [1], [0, 0, 1, 1], [], []>} : vector<8x256xf32>, vector<256x128xf32>, vector<8x128xf32> -> vector<8x128xf32>
    %5 = vector.extract_strided_slice %2 {offsets = [0, 0], sizes = [1, 128], strides = [1, 1]} : vector<8x128xf32> to vector<1x128xf32>
    %6 = vector.broadcast %5 : vector<1x128xf32> to vector<8x128xf32>
    %7 = arith.addf %4, %6 : vector<8x128xf32>
    %cst_6 = arith.constant 0.000000e+00 : f32
    %8 = vector.broadcast %cst_6 : f32 to vector<8x128xf32>
    %9 = arith.maximumf %7, %8 : vector<8x128xf32>
    %c256 = arith.constant 256 : index
    %c0_7 = arith.constant 0 : index
    %10 = vector.load %arg3[%c256, %c0_7] : memref<856x128xf32, #tpu.memory_space<vmem>>, vector<128x128xf32>
    %cst_8 = arith.constant dense<0.000000e+00> : vector<8x128xf32>
    %11 = tpu.matmul %9, %10, %cst_8 {dimension_numbers = #tpu.dot_dimension_numbers<[1], [0], [0], [1], [0, 0, 1, 1], [], []>} : vector<8x128xf32>, vector<128x128xf32>, vector<8x128xf32> -> vector<8x128xf32>
    %c384 = arith.constant 384 : index
    %c0_9 = arith.constant 0 : index
    %12 = vector.load %arg3[%c384, %c0_9] : memref<856x128xf32, #tpu.memory_space<vmem>>, vector<36x128xf32>
    %cst_10 = arith.constant dense<0.000000e+00> : vector<8x128xf32>
    %13 = tpu.matmul %1, %12, %cst_10 {dimension_numbers = #tpu.dot_dimension_numbers<[1], [0], [0], [1], [0, 0, 1, 1], [], []>} : vector<8x36xf32>, vector<36x128xf32>, vector<8x128xf32> -> vector<8x128xf32>
    %14 = arith.addf %11, %13 : vector<8x128xf32>
    %15 = vector.extract_strided_slice %2 {offsets = [1, 0], sizes = [1, 128], strides = [1, 1]} : vector<8x128xf32> to vector<1x128xf32>
    %16 = vector.broadcast %15 : vector<1x128xf32> to vector<8x128xf32>
    %17 = arith.addf %14, %16 : vector<8x128xf32>
    %cst_11 = arith.constant 0.000000e+00 : f32
    %18 = vector.broadcast %cst_11 : f32 to vector<8x128xf32>
    %19 = arith.maximumf %17, %18 : vector<8x128xf32>
    %c424 = arith.constant 424 : index
    %c0_12 = arith.constant 0 : index
    %20 = vector.load %arg3[%c424, %c0_12] : memref<856x128xf32, #tpu.memory_space<vmem>>, vector<128x128xf32>
    %cst_13 = arith.constant dense<0.000000e+00> : vector<8x128xf32>
    %21 = tpu.matmul %19, %20, %cst_13 {dimension_numbers = #tpu.dot_dimension_numbers<[1], [0], [0], [1], [0, 0, 1, 1], [], []>} : vector<8x128xf32>, vector<128x128xf32>, vector<8x128xf32> -> vector<8x128xf32>
    %22 = vector.extract_strided_slice %2 {offsets = [2, 0], sizes = [1, 128], strides = [1, 1]} : vector<8x128xf32> to vector<1x128xf32>
    %23 = vector.broadcast %22 : vector<1x128xf32> to vector<8x128xf32>
    %24 = arith.addf %21, %23 : vector<8x128xf32>
    %cst_14 = arith.constant 0.000000e+00 : f32
    %25 = vector.broadcast %cst_14 : f32 to vector<8x128xf32>
    %26 = arith.maximumf %24, %25 : vector<8x128xf32>
    %c552 = arith.constant 552 : index
    %c0_15 = arith.constant 0 : index
    %27 = vector.load %arg3[%c552, %c0_15] : memref<856x128xf32, #tpu.memory_space<vmem>>, vector<128x64xf32>
    %cst_16 = arith.constant dense<0.000000e+00> : vector<8x64xf32>
    %28 = tpu.matmul %26, %27, %cst_16 {dimension_numbers = #tpu.dot_dimension_numbers<[1], [0], [0], [1], [0, 0, 1, 1], [], []>} : vector<8x128xf32>, vector<128x64xf32>, vector<8x64xf32> -> vector<8x64xf32>
    %29 = vector.extract_strided_slice %2 {offsets = [3, 0], sizes = [1, 64], strides = [1, 1]} : vector<8x128xf32> to vector<1x64xf32>
    %30 = vector.broadcast %29 : vector<1x64xf32> to vector<8x64xf32>
    %31 = arith.addf %28, %30 : vector<8x64xf32>
    %cst_17 = arith.constant 0.000000e+00 : f32
    %32 = vector.broadcast %cst_17 : f32 to vector<8x64xf32>
    %33 = arith.maximumf %31, %32 : vector<8x64xf32>
    %c680 = arith.constant 680 : index
    %c0_18 = arith.constant 0 : index
    %34 = vector.load %arg3[%c680, %c0_18] : memref<856x128xf32, #tpu.memory_space<vmem>>, vector<64x64xf32>
    %cst_19 = arith.constant dense<0.000000e+00> : vector<8x64xf32>
    %35 = tpu.matmul %33, %34, %cst_19 {dimension_numbers = #tpu.dot_dimension_numbers<[1], [0], [0], [1], [0, 0, 1, 1], [], []>} : vector<8x64xf32>, vector<64x64xf32>, vector<8x64xf32> -> vector<8x64xf32>
    %36 = vector.extract_strided_slice %2 {offsets = [4, 0], sizes = [1, 64], strides = [1, 1]} : vector<8x128xf32> to vector<1x64xf32>
    %37 = vector.broadcast %36 : vector<1x64xf32> to vector<8x64xf32>
    %38 = arith.addf %35, %37 : vector<8x64xf32>
    %cst_20 = arith.constant 0.000000e+00 : f32
    %39 = vector.broadcast %cst_20 : f32 to vector<8x64xf32>
    %40 = arith.maximumf %38, %39 : vector<8x64xf32>
    %c744 = arith.constant 744 : index
    %c0_21 = arith.constant 0 : index
    %41 = vector.load %arg3[%c744, %c0_21] : memref<856x128xf32, #tpu.memory_space<vmem>>, vector<64x32xf32>
    %cst_22 = arith.constant dense<0.000000e+00> : vector<8x32xf32>
    %42 = tpu.matmul %40, %41, %cst_22 {dimension_numbers = #tpu.dot_dimension_numbers<[1], [0], [0], [1], [0, 0, 1, 1], [], []>} : vector<8x64xf32>, vector<64x32xf32>, vector<8x32xf32> -> vector<8x32xf32>
    %43 = vector.extract_strided_slice %2 {offsets = [5, 0], sizes = [1, 32], strides = [1, 1]} : vector<8x128xf32> to vector<1x32xf32>
    %44 = vector.broadcast %43 : vector<1x32xf32> to vector<8x32xf32>
    %45 = arith.addf %42, %44 : vector<8x32xf32>
    %cst_23 = arith.constant 0.000000e+00 : f32
    %46 = vector.broadcast %cst_23 : f32 to vector<8x32xf32>
    %47 = arith.maximumf %45, %46 : vector<8x32xf32>
    %c808 = arith.constant 808 : index
    %c0_24 = arith.constant 0 : index
    %48 = vector.load %arg3[%c808, %c0_24] : memref<856x128xf32, #tpu.memory_space<vmem>>, vector<32x16xf32>
    %cst_25 = arith.constant dense<0.000000e+00> : vector<8x16xf32>
    %49 = tpu.matmul %47, %48, %cst_25 {dimension_numbers = #tpu.dot_dimension_numbers<[1], [0], [0], [1], [0, 0, 1, 1], [], []>} : vector<8x32xf32>, vector<32x16xf32>, vector<8x16xf32> -> vector<8x16xf32>
    %50 = vector.extract_strided_slice %2 {offsets = [6, 0], sizes = [1, 16], strides = [1, 1]} : vector<8x128xf32> to vector<1x16xf32>
    %51 = vector.broadcast %50 : vector<1x16xf32> to vector<8x16xf32>
    %52 = arith.addf %49, %51 : vector<8x16xf32>
    %cst_26 = arith.constant 0.000000e+00 : f32
    %53 = vector.broadcast %cst_26 : f32 to vector<8x16xf32>
    %54 = arith.maximumf %52, %53 : vector<8x16xf32>
    %c840 = arith.constant 840 : index
    %c0_27 = arith.constant 0 : index
    %55 = vector.load %arg3[%c840, %c0_27] : memref<856x128xf32, #tpu.memory_space<vmem>>, vector<1x16xf32>
    %56 = vector.broadcast %55 : vector<1x16xf32> to vector<8x16xf32>
    %57 = arith.mulf %54, %56 : vector<8x16xf32>
    %cst_28 = arith.constant dense<0.000000e+00> : vector<8xf32>
    %58 = vector.multi_reduction <add>, %57, %cst_28 [1] : vector<8x16xf32> to vector<8xf32>
    %59 = vector.shape_cast %58 : vector<8xf32> to vector<8x1xf32>
    %60 = vector.extract_strided_slice %2 {offsets = [7, 0], sizes = [1, 1], strides = [1, 1]} : vector<8x128xf32> to vector<1x1xf32>
    %61 = vector.broadcast %60 : vector<1x1xf32> to vector<8x1xf32>
    %62 = arith.addf %59, %61 : vector<8x1xf32>
    %cst_29 = arith.constant 0.000000e+00 : f32
    %63 = vector.broadcast %cst_29 : f32 to vector<8x1xf32>
    %64 = arith.subf %63, %62 : vector<8x1xf32>
    %65 = math.exp %64 : vector<8x1xf32>
    %cst_30 = arith.constant 1.000000e+00 : f32
    %66 = vector.broadcast %cst_30 : f32 to vector<8x1xf32>
    %67 = arith.addf %66, %65 : vector<8x1xf32>
    %cst_31 = arith.constant 1.000000e+00 : f32
    %68 = vector.broadcast %cst_31 : f32 to vector<8x1xf32>
    %69 = arith.divf %68, %67 : vector<8x1xf32>
    %c0_32 = arith.constant 0 : index
    %c0_33 = arith.constant 0 : index
    %70 = vector.load %arg4[%c0_32, %c0_33] : memref<8x1xf32, #tpu.memory_space<vmem>>, vector<8x1xf32>
    tpu.vector_store %arg4[%c0_32, %c0_33], %69 {strides = array<i32>} : memref<8x1xf32, #tpu.memory_space<vmem>>, vector<8x1xf32>,
    return
  }
  func.func @transform_0(%arg0: i32) -> (i32, i32) {
    %c0_i32 = arith.constant 0 : i32
    %c0_i32_0 = arith.constant 0 : i32
    return %arg0, %c0_i32 : i32, i32
  }
  func.func @transform_1(%arg0: i32) -> (i32, i32) {
    %c0_i32 = arith.constant 0 : i32
    %c0_i32_0 = arith.constant 0 : i32
    return %arg0, %c0_i32 : i32, i32
  }
  func.func @transform_2(%arg0: i32) -> (i32, i32) {
    %c0_i32 = arith.constant 0 : i32
    %c0_i32_0 = arith.constant 0 : i32
    %c0_i32_1 = arith.constant 0 : i32
    return %c0_i32, %c0_i32_0 : i32, i32
  }
  func.func @transform_3(%arg0: i32) -> (i32, i32) {
    %c0_i32 = arith.constant 0 : i32
    %c0_i32_0 = arith.constant 0 : i32
    return %arg0, %c0_i32 : i32, i32
  }
}

</mosaic_0001>

<bundles_post_ra>
// kernel: pairwise_forward_batched.1
= control target key start
LH: loop header
LB: loop body
LE: loop exit
PB: predicated region body
PF: predicated region fallthrough
CT: control target
= control target key end

     0   :  { %8 = vsyncpa [#allocation3], 0  ;;  %s1099_s12 = smov [#allocation2]   ;;  %s1251_s0 = inlined_call_operand.vmem [shape: f32[8,256], index: 0, kind: input, shape index: {}]   ;;  %s1252_s1 = inlined_call_operand.vmem [shape: f32[8,36], index: 1, kind: input, shape index: {}]   ;;  %s1253_s2 = inlined_call_operand.hbm [shape: f32[856,128], index: 2, kind: input, shape index: {}]   ;;  %s1254_s3 = inlined_call_operand.vmem [shape: f32[8,1], index: 3, kind: output, shape index: {}]  }
   0x1   :  { %s18_s13 = sshll.u32 %s1099_s12, 4  ;;  %s19_s13 = int_to_ptr.vmem [resolvable:$true] %s18_s13 }
   0x2   :  { %s1085_s14 = scalar_lea.vmem %s19_s13, 13696  ;;  %p1090_p1 = scmp.lt.s32.totalorder %s19_s13, %s19_s13 }
   0x3   :  { %p1086_p0 = scmp.ne.s32.totalorder %s19_s13, %s1085_s14  ;;  %p1091_p2 = scmp.lt.s32.totalorder %s1085_s14, %s1085_s14 }
   0x5   :  { %p1092_p3 = por %p1091_p2, %p1090_p1 }
   0x7   :  { %p1093_p4 = pnand %p1092_p3, %p1086_p0 }
   0x9   :  { %1096 = shalt.err (!%p1093_p4)
}
   0xa   :  { %s1100_s15 = smov 128   ;;  %s1101_s16 = smov 8  }
   0xb   :  { %24 = dma.hbm_to_vmem [thread:$0]  %s1253_s2, 13696, %s19_s13, [#allocation3], %s1100_s15, %s1100_s15, %s1101_s16  }
   0xc   :  { %1097 = dma.done.wait [#allocation3], 13696  }
   0xd   :  { %1098 = vsyncadd [#allocation3], 4294953600  ;;  %v1102_v0 = vmov 0.0   ;;  %vm1103_vm0 = vmmov 0   ;;  %v63_v1 = vld [vmem:[#allocation2 + $0xf8] sm:$0xff]  ;;  %v62_v3 = vld [vmem:[#allocation2 + $0xf0] sm:$0xff] }
   0xe   :  { %901 = vmatprep.subr.mxu1 %v1102_v0  ;;  %911 = vmatprep.mubr.msk.f32.mxu1 %vm1103_vm0, %v1102_v0  ;;  %v47_v2 = vld [vmem:[#allocation2 + $0x78] sm:$0xff]  ;;  %v46_v4 = vld [vmem:[#allocation2 + $0x70] sm:$0xff]  ;;  %v61_v5 = vld [vmem:[#allocation2 + $0xe8] sm:$0xff]  ;;  %vm164_vm1 = vcmask 1043456   ;;  %vm160_vm2 = vcmask 293888   ;;  %vm508_vm3 = vcmask 523264  }
   0xf   :  { %786 = vmatprep.subr.mxu0 %v63_v1  ;;  %v45_v6 = vld [vmem:[#allocation2 + $0x68] sm:$0xff]  ;;  %v60_v7 = vld [vmem:[#allocation2 + $0xe0] sm:$0xff]  ;;  %v59_v9 = vld [vmem:[#allocation2 + $0xd8] sm:$0xff]  ;;  %vm677_vm4 = vcmask 261120   ;;  %vm758_vm5 = vcmask 130048   ;;  %vm773_vm6 = vcmask 7168  }
  0x10   :  { %787 = vmatpush3.msra.mxu0 %v47_v2  ;;  %v44_v8 = vld [vmem:[#allocation2 + $0x60] sm:$0xff]  ;;  %v43_v10 = vld [vmem:[#allocation2 + $0x58] sm:$0xff]  ;;  %v58_v11 = vld [vmem:[#allocation2 + $0xd0] sm:$0xff] }
  0x11   :  { %788 = vmatprep.subr.mxu0 %v62_v3  ;;  %v42_v12 = vld [vmem:[#allocation2 + $0x50] sm:$0xff]  ;;  %v57_v13 = vld [vmem:[#allocation2 + $0xc8] sm:$0xff]  ;;  %v159_v16 = vld [vmem:[#allocation2 + $0x1a0] sm:$0xf] }
  0x12   :  { %789 = vmatpush3.msra.mxu0 %v46_v4  ;;  %v29_v14 = vld [vmem:[%s1251_s0 + $0x8] sm:$0xff]  ;;  %v158_v17 = vld [vmem:[#allocation2 + $0x198] sm:$0xff]  ;;  %v56_v18 = vld [vmem:[#allocation2 + $0xc0] sm:$0xff]  ;;  %902 = vmatpush3.msk.msra.mxu1 %vm164_vm1, %v159_v16 }
  0x13   :  { %790 = vmatprep.subr.mxu0 %v61_v5  ;;  %v41_v15 = vld [vmem:[#allocation2 + $0x48] sm:$0xff]  ;;  %132 = vmatprep.mubr.f32.mxu0 %v29_v14  ;;  %v40_v19 = vld [vmem:[#allocation2 + $0x40] sm:$0xff]  ;;  %v157_v20 = vld [vmem:[#allocation2 + $0x190] sm:$0xff] }
  0x14   :  { %791 = vmatpush3.msra.mxu0 %v45_v6  ;;  %903 = vmatprep.subr.mxu1 %v1102_v0  ;;  %v55_v21 = vld [vmem:[#allocation2 + $0xb8] sm:$0xff]  ;;  %v156_v23 = vld [vmem:[#allocation2 + $0x188] sm:$0xff]  ;;  %v54_v24 = vld [vmem:[#allocation2 + $0xb0] sm:$0xff] }
  0x15   :  { %792 = vmatprep.subr.mxu0 %v60_v7  ;;  %904 = vmatpush3.msra.mxu1 %v158_v17  ;;  %v39_v22 = vld [vmem:[#allocation2 + $0x38] sm:$0xff]  ;;  %v38_v25 = vld [vmem:[#allocation2 + $0x30] sm:$0xff]  ;;  %v155_v26 = vld [vmem:[#allocation2 + $0x180] sm:$0xff]  ;;  %v64_v7 = vlaneseq }
  0x16   :  { %793 = vmatpush3.msra.mxu0 %v44_v8  ;;  %905 = vmatprep.subr.mxu1 %v1102_v0  ;;  %v53_v27 = vld [vmem:[#allocation2 + $0xa8] sm:$0xff]  ;;  %v30_v28 = vld [vmem:[%s1252_s1] sm:$0xff]  ;;  %v154_v31 = vld [vmem:[#allocation2 + $0x178] sm:$0xff] }
  0x17   :  { %794 = vmatprep.subr.mxu0 %v59_v9  ;;  %906 = vmatpush3.msra.mxu1 %v157_v20  ;;  %v37_v29 = vld [vmem:[#allocation2 + $0x28] sm:$0xff]  ;;  %v52_v30 = vld [vmem:[#allocation2 + $0xa0] sm:$0xff]  ;;  %v51_v33 = vld [vmem:[#allocation2 + $0x98] sm:$0xff]  ;;  %v1179_v9 = vshrl.u32 %v64_v7, 7 }
  0x18   :  { %795 = vmatpush3.msra.mxu0 %v43_v10  ;;  %907 = vmatprep.subr.mxu1 %v1102_v0  ;;  %v36_v32 = vld [vmem:[#allocation2 + $0x20] sm:$0xff]  ;;  %v153_v34 = vld [vmem:[#allocation2 + $0x170] sm:$0xff]  ;;  %v35_v35 = vld [vmem:[#allocation2 + $0x18] sm:$0xff] }
  0x19   :  { %796 = vmatprep.subr.mxu0 %v58_v11  ;;  %908 = vmatpush3.msra.mxu1 %v156_v23  ;;  %v50_v36 = vld [vmem:[#allocation2 + $0x90] sm:$0xff]  ;;  %v152_v37 = vld [vmem:[#allocation2 + $0x168] sm:$0xff]  ;;  %v151_v40 = vld [vmem:[#allocation2 + $0x160] sm:$0xff]  ;;  %v66_v10 = vsub.s32 0, %v1179_v9 }
  0x1a   :  { %797 = vmatpush3.msra.mxu0 %v42_v12  ;;  %909 = vmatprep.subr.mxu1 %v1102_v0  ;;  %v34_v38 = vld [vmem:[#allocation2 + $0x10] sm:$0xff]  ;;  %v49_v39 = vld [vmem:[#allocation2 + $0x88] sm:$0xff]  ;;  %v48_v42 = vld [vmem:[#allocation2 + $0x80] sm:$0xff] }
  0x1b   :  { %798 = vmatprep.subr.mxu0 %v57_v13  ;;  %910 = vmatpush3.msra.mxu1 %v155_v26  ;;  %v33_v41 = vld [vmem:[#allocation2 + $0x8] sm:$0xff]  ;;  %v150_v43 = vld [vmem:[#allocation2 + $0x158] sm:$0xff]  ;;  %v32_v44 = vld [vmem:[#allocation2] sm:$0xff] }
  0x1c   :  { %799 = vmatpush3.msra.mxu0 %v41_v15  ;;  %912 = vmatmul.mubr.msk.f32.vlgmr.msra.gmra.mxu1 %vm160_vm2, %v30_v28  ;;  %v28_v45 = vld [vmem:[%s1251_s0] sm:$0xff]  ;;  %v149_v46 = vld [vmem:[#allocation2 + $0x150] sm:$0xff]  ;;  %v148_v47 = vld [vmem:[#allocation2 + $0x148] sm:$0xff] }
  0x1d   :  { %800 = vmatprep.subr.mxu0 %v56_v18  ;;  %914 = vmatprep.subr.mxu1 %v1102_v0  ;;  %v147_v48 = vld [vmem:[#allocation2 + $0x140] sm:$0xff]  ;;  %v146_v49 = vld [vmem:[#allocation2 + $0x138] sm:$0xff]  ;;  %v145_v50 = vld [vmem:[#allocation2 + $0x130] sm:$0xff] }
  0x1e   :  { %801 = vmatpush3.msra.mxu0 %v40_v19  ;;  %915 = vmatpush3.msra.mxu1 %v154_v31  ;;  %v144_v51 = vld [vmem:[#allocation2 + $0x128] sm:$0xff]  ;;  %v143_v52 = vld [vmem:[#allocation2 + $0x120] sm:$0xff]  ;;  %v142_v53 = vld [vmem:[#allocation2 + $0x118] sm:$0xff] }
  0x1f   :  { %802 = vmatprep.subr.mxu0 %v55_v21  ;;  %916 = vmatprep.subr.mxu1 %v1102_v0  ;;  %v141_v54 = vld [vmem:[#allocation2 + $0x110] sm:$0xff]  ;;  %v140_v55 = vld [vmem:[#allocation2 + $0x108] sm:$0xff]  ;;  %v139_v56 = vld [vmem:[#allocation2 + $0x100] sm:$0xff] }
  0x20   :  { %803 = vmatpush3.msra.mxu0 %v39_v22  ;;  %917 = vmatpush3.msra.mxu1 %v153_v34  ;;  %v329_v57 = vld [vmem:[#allocation2 + $0x220] sm:$0xff]  ;;  %v328_v58 = vld [vmem:[#allocation2 + $0x218] sm:$0xff]  ;;  %v327_v59 = vld [vmem:[#allocation2 + $0x210] sm:$0xff] }
  0x21   :  { %804 = vmatprep.subr.mxu0 %v54_v24  ;;  %918 = vmatprep.subr.mxu1 %v1102_v0  ;;  %v326_v60 = vld [vmem:[#allocation2 + $0x208] sm:$0xff]  ;;  %v325_v61 = vld [vmem:[#allocation2 + $0x200] sm:$0xff]  ;;  %v324_v62 = vld [vmem:[#allocation2 + $0x1f8] sm:$0xff] }
  0x22   :  { %805 = vmatpush3.msra.mxu0 %v38_v25  ;;  %919 = vmatpush3.msra.mxu1 %v152_v37  ;;  %v323_v63 = vld [vmem:[#allocation2 + $0x1f0] sm:$0xff]  ;;  %v322_v1 = vld [vmem:[#allocation2 + $0x1e8] sm:$0xff]  ;;  %v321_v2 = vld [vmem:[#allocation2 + $0x1e0] sm:$0xff] }
  0x23   :  { %806 = vmatprep.subr.mxu0 %v53_v27  ;;  %920 = vmatprep.subr.mxu1 %v1102_v0  ;;  %v320_v3 = vld [vmem:[#allocation2 + $0x1d8] sm:$0xff]  ;;  %v319_v4 = vld [vmem:[#allocation2 + $0x1d0] sm:$0xff]  ;;  %v318_v5 = vld [vmem:[#allocation2 + $0x1c8] sm:$0xff] }
  0x24   :  { %807 = vmatpush3.msra.mxu0 %v37_v29  ;;  %921 = vmatpush3.msra.mxu1 %v151_v40  ;;  %v1182_v11 = vld [vmem:[#allocation2 + $0x350] sm:$0xff]  ;;  %v317_v18 = vld [vmem:[#allocation2 + $0x1c0] sm:$0xff]  ;;  %v316_v19 = vld [vmem:[#allocation2 + $0x1b8] sm:$0xff] }
  0x25   :  { %808 = vmatprep.subr.mxu0 %v52_v30  ;;  %922 = vmatprep.subr.mxu1 %v1102_v0  ;;  %v67_v13 = vrot.slane %v1182_v11, %v66_v10  ;;  %v315_v20 = vld [vmem:[#allocation2 + $0x1b0] sm:$0xff]  ;;  %v314_v21 = vld [vmem:[#allocation2 + $0x1a8] sm:$0xff]  ;;  %v420_v22 = vld [vmem:[#allocation2 + $0x2a0] sm:$0xff] }
  0x26   :  { %809 = vmatpush3.msra.mxu0 %v36_v32  ;;  %923 = vmatpush3.msra.mxu1 %v150_v43  ;;  %v419_v23 = vld [vmem:[#allocation2 + $0x298] sm:$0xff]  ;;  %v418_v24 = vld [vmem:[#allocation2 + $0x290] sm:$0xff]  ;;  %v417_v25 = vld [vmem:[#allocation2 + $0x288] sm:$0xff] }
  0x27   :  { %810 = vmatprep.subr.mxu0 %v51_v33  ;;  %924 = vmatprep.subr.mxu1 %v1102_v0  ;;  %v416_v26 = vld [vmem:[#allocation2 + $0x280] sm:$0xff]  ;;  %v415_v27 = vld [vmem:[#allocation2 + $0x278] sm:$0xff]  ;;  %v414_v28 = vld [vmem:[#allocation2 + $0x270] sm:$0xff] }
  0x28   :  { %811 = vmatpush3.msra.mxu0 %v35_v35  ;;  %925 = vmatpush3.msra.mxu1 %v149_v46  ;;  %v413_v29 = vld [vmem:[#allocation2 + $0x268] sm:$0xff]  ;;  %v412_v30 = vld [vmem:[#allocation2 + $0x260] sm:$0xff]  ;;  %v411_v31 = vld [vmem:[#allocation2 + $0x258] sm:$0xff]  ;;  %v310_v35 = vsub.s32 1, %v1179_v9 }
  0x29   :  { %812 = vmatprep.subr.mxu0 %v50_v36  ;;  %926 = vmatprep.subr.mxu1 %v1102_v0  ;;  %v410_v32 = vld [vmem:[#allocation2 + $0x250] sm:$0xff]  ;;  %v409_v33 = vld [vmem:[#allocation2 + $0x248] sm:$0xff]  ;;  %v408_v34 = vld [vmem:[#allocation2 + $0x240] sm:$0xff] }
  0x2a   :  { %813 = vmatpush3.msra.mxu0 %v34_v38  ;;  %946 = vmatprep.mubr.msk.f32.mxu1 %vm1103_vm0, %v1102_v0  ;;  %v311_v36 = vrot.slane %v1182_v11, %v310_v35  ;;  %v406_v43 = vld [vmem:[#allocation2 + $0x230] sm:$0xff]  ;;  %v502_v46 = vld [vmem:[#allocation2 + $0x2d8] sm:$0xff]  ;;  %v583_v10 = vld [vmem:[#allocation2 + $0x2e8] sm:$0xff] }
  0x2b   :  { %814 = vmatprep.subr.mxu0 %v49_v39  ;;  %927 = vmatpush3.msra.mxu1 %v148_v47  ;;  %v501_v47 = vld [vmem:[#allocation2 + $0x2d0] sm:$0xff]  ;;  %v585_v7 = vld [vmem:[#allocation2 + $0x2f8] sm:$0xff] }
  0x2c   :  { %815 = vmatpush3.msra.mxu0 %v33_v41  ;;  %928 = vmatprep.subr.mxu1 %v1102_v0 }
  0x2d   :  { %816 = vmatprep.subr.mxu0 %v48_v42  ;;  %929 = vmatpush3.msra.mxu1 %v147_v48  ;;  %v407_v42 = vld [vmem:[#allocation2 + $0x238] sm:$0xff]  ;;  %v500_v48 = vld [vmem:[#allocation2 + $0x2c8] sm:$0xff] }
  0x2e   :  { %817 = vmatpush3.msra.mxu0 %v32_v44  ;;  %930 = vmatprep.subr.mxu1 %v1102_v0  ;;  %v405_v44 = vld [vmem:[#allocation2 + $0x228] sm:$0xff] }
  0x2f   :  { %133 = vmatmul.mubr.f32.vlgmr.msra.gmra.mxu0 %v28_v45  ;;  %949 = vmatprep.subr.mxu0 %v1102_v0  ;;  %v503_v45 = vld [vmem:[#allocation2 + $0x2e0] sm:$0xff] }
  0x30   :  { %981 = vmatprep.mubr.msk.f32.mxu0 %vm1103_vm0, %v1102_v0  ;;  %931 = vmatpush3.msra.mxu1 %v146_v49  ;;  %v499_v49 = vld [vmem:[#allocation2 + $0x2c0] sm:$0xff] }
  0x31   :  { %932 = vmatprep.subr.mxu1 %v1102_v0  ;;  %950 = vmatpush3.msra.mxu0 %v329_v57  ;;  %v497_v57 = vld [vmem:[#allocation2 + $0x2b0] sm:$0xff] }
  0x32   :  { %933 = vmatpush3.msra.mxu1 %v145_v50  ;;  %951 = vmatprep.subr.mxu0 %v1102_v0  ;;  %v332_v50 = vsub.s32 2, %v1179_v9 }
  0x33   :  { %934 = vmatprep.subr.mxu1 %v1102_v0  ;;  %952 = vmatpush3.msra.mxu0 %v328_v58  ;;  %v496_v58 = vld [vmem:[#allocation2 + $0x2a8] sm:$0xff] }
  0x34   :  { %935 = vmatpush3.msra.mxu1 %v144_v51  ;;  %953 = vmatprep.subr.mxu0 %v1102_v0  ;;  %v333_v51 = vrot.slane %v1182_v11, %v332_v50 }
  0x35   :  { %936 = vmatprep.subr.mxu1 %v1102_v0  ;;  %954 = vmatpush3.msra.mxu0 %v327_v59  ;;  %v590_v59 = vld [vmem:[#allocation2 + $0x320] sm:$0xff] }
  0x36   :  { %937 = vmatpush3.msra.mxu1 %v143_v52  ;;  %955 = vmatprep.subr.mxu0 %v1102_v0 }
  0x37   :  { %938 = vmatprep.subr.mxu1 %v1102_v0  ;;  %956 = vmatpush3.msra.mxu0 %v326_v60  ;;  %v589_v60 = vld [vmem:[#allocation2 + $0x318] sm:$0xff] }
  0x38   :  { %939 = vmatpush3.msra.mxu1 %v142_v53  ;;  %957 = vmatprep.subr.mxu0 %v1102_v0 }
  0x39   :  { %940 = vmatprep.subr.mxu1 %v1102_v0  ;;  %958 = vmatpush3.msra.mxu0 %v325_v61  ;;  %v588_v61 = vld [vmem:[#allocation2 + $0x310] sm:$0xff] }
  0x3a   :  { %941 = vmatpush3.msra.mxu1 %v141_v54  ;;  %959 = vmatprep.subr.mxu0 %v1102_v0 }
  0x3b   :  { %942 = vmatprep.subr.mxu1 %v1102_v0  ;;  %960 = vmatpush3.msra.mxu0 %v324_v62  ;;  %v587_v62 = vld [vmem:[#allocation2 + $0x308] sm:$0xff] }
  0x3c   :  { %943 = vmatpush3.msra.mxu1 %v140_v55  ;;  %961 = vmatprep.subr.mxu0 %v1102_v0 }
  0x3d   :  { %944 = vmatprep.subr.mxu1 %v1102_v0  ;;  %962 = vmatpush3.msra.mxu0 %v323_v63  ;;  %v586_v63 = vld [vmem:[#allocation2 + $0x300] sm:$0xff] }
  0x3e   :  { %945 = vmatpush3.msra.mxu1 %v139_v56  ;;  %963 = vmatprep.subr.mxu0 %v1102_v0  ;;  %v498_v56 = vld [vmem:[#allocation2 + $0x2b8] sm:$0xff] }
  0x3f   :  { %984 = vmatprep.subr.mxu1 %v1102_v0  ;;  %964 = vmatpush3.msra.mxu0 %v322_v1  ;;  %v423_v1 = vsub.s32 3, %v1179_v9 }
  0x40   :  { %965 = vmatprep.subr.mxu0 %v1102_v0 }
  0x41   :  { %966 = vmatpush3.msra.mxu0 %v321_v2  ;;  %v424_v2 = vrot.slane %v1182_v11, %v423_v1 }
  0x42   :  { %967 = vmatprep.subr.mxu0 %v1102_v0 }
  0x43   :  { %968 = vmatpush3.msra.mxu0 %v320_v3 }
  0x44   :  { %969 = vmatprep.subr.mxu0 %v1102_v0 }
  0x45   :  { %970 = vmatpush3.msra.mxu0 %v319_v4 }
  0x46   :  { %971 = vmatprep.subr.mxu0 %v1102_v0 }
  0x47   :  { %972 = vmatpush3.msra.mxu0 %v318_v5 }
  0x48   :  { %973 = vmatprep.subr.mxu0 %v1102_v0 }
  0x49   :  { %974 = vmatpush3.msra.mxu0 %v317_v18 }
  0x4a   :  { %975 = vmatprep.subr.mxu0 %v1102_v0 }
  0x4b   :  { %976 = vmatpush3.msra.mxu0 %v316_v19  ;;  %v671_v19 = vld [vmem:[#allocation2 + $0x338] sm:$0xff] }
  0x4c   :  { %977 = vmatprep.subr.mxu0 %v1102_v0 }
  0x4d   :  { %978 = vmatpush3.msra.mxu0 %v315_v20  ;;  %v670_v20 = vld [vmem:[#allocation2 + $0x330] sm:$0xff] }
  0x4e   :  { %979 = vmatprep.subr.mxu0 %v1102_v0 }
  0x4f   :  { %980 = vmatpush3.msra.mxu0 %v314_v21  ;;  %v669_v21 = vld [vmem:[#allocation2 + $0x328] sm:$0xff] }
  0x50   :  { %1019 = vmatprep.subr.mxu0 %v1102_v0 }
  0xdc   :  { %v1177_v6 = vpop.f32.mrf.mxu1 }
  0xde   :  { %v913_v8 = vpop.f32.mrf.mxu1 }
  0xdf   :  { %v584_v8 = vld [vmem:[#allocation2 + $0x2f0] sm:$0xff] }
  0xef   :  { %v818_v12 = vpop.f32.mrf.mxu0 }
  0xf1   :  { %v819_v14 = vpop.f32.mrf.mxu0 }
  0xf2   :  { %v820_v15 = vadd.f32 %v819_v14, %v818_v12  ;;  %v672_v12 = vld [vmem:[#allocation2 + $0x340] sm:$0xff] }
  0xf4   :  { %v135_v16 = vadd.f32 %v820_v15, %v67_v13  ;;  %v506_v13 = vsub.s32 4, %v1179_v9 }
  0xf6   :  { %v138_v17 = vmax.f32 %v135_v16, 0.0  ;;  %v507_v14 = vrot.slane %v1182_v11, %v506_v13 }
  0xf8   :  { %947 = vmatmul.mubr.f32.vlgmr.msra.gmra.mxu1 %v138_v17 }
  0xf9   :  { %1016 = vmatprep.mubr.msk.f32.mxu1 %vm1103_vm0, %v1102_v0  ;;  %985 = vmatpush3.msra.mxu1 %v420_v22  ;;  %v593_v22 = vsub.s32 5, %v1179_v9 }
  0xfa   :  { %986 = vmatprep.subr.mxu1 %v1102_v0 }
  0xfb   :  { %987 = vmatpush3.msra.mxu1 %v419_v23  ;;  %v594_v23 = vrot.slane %v1182_v11, %v593_v22 }
  0xfc   :  { %988 = vmatprep.subr.mxu1 %v1102_v0 }
  0xfd   :  { %989 = vmatpush3.msra.mxu1 %v418_v24 }
  0xfe   :  { %990 = vmatprep.subr.mxu1 %v1102_v0 }
  0xff   :  { %991 = vmatpush3.msra.mxu1 %v417_v25 }
 0x100   :  { %992 = vmatprep.subr.mxu1 %v1102_v0 }
 0x101   :  { %993 = vmatpush3.msra.mxu1 %v416_v26 }
 0x102   :  { %994 = vmatprep.subr.mxu1 %v1102_v0 }
 0x103   :  { %995 = vmatpush3.msra.mxu1 %v415_v27 }
 0x104   :  { %996 = vmatprep.subr.mxu1 %v1102_v0 }
 0x105   :  { %997 = vmatpush3.msra.mxu1 %v414_v28  ;;  %v675_v28 = vsub.s32 6, %v1179_v9 }
 0x106   :  { %998 = vmatprep.subr.mxu1 %v1102_v0 }
 0x107   :  { %999 = vmatpush3.msra.mxu1 %v413_v29  ;;  %v676_v29 = vrot.slane %v1182_v11, %v675_v28 }
 0x108   :  { %1000 = vmatprep.subr.mxu1 %v1102_v0 }
 0x109   :  { %1001 = vmatpush3.msra.mxu1 %v412_v30 }
 0x10a   :  { %1002 = vmatprep.subr.mxu1 %v1102_v0 }
 0x10b   :  { %1003 = vmatpush3.msra.mxu1 %v411_v31 }
 0x10c   :  { %1004 = vmatprep.subr.mxu1 %v1102_v0 }
 0x10d   :  { %1005 = vmatpush3.msra.mxu1 %v410_v32 }
 0x10e   :  { %1006 = vmatprep.subr.mxu1 %v1102_v0 }
 0x10f   :  { %1007 = vmatpush3.msra.mxu1 %v409_v33 }
 0x110   :  { %1008 = vmatprep.subr.mxu1 %v1102_v0 }
 0x111   :  { %1009 = vmatpush3.msra.mxu1 %v408_v34 }
 0x112   :  { %1010 = vmatprep.subr.mxu1 %v1102_v0 }
 0x113   :  { %1011 = vmatpush3.msra.mxu1 %v407_v42 }
 0x114   :  { %1012 = vmatprep.subr.mxu1 %v1102_v0 }
 0x115   :  { %1013 = vmatpush3.msra.mxu1 %v406_v43 }
 0x116   :  { %1014 = vmatprep.subr.mxu1 %v1102_v0 }
 0x117   :  { %1015 = vmatpush3.msra.mxu1 %v405_v44 }
 0x118   :  { %1038 = vmatprep.subr.mxu1 %v1102_v0 }
 0x1b8   :  { %v304_v37 = vpop.f32.mrf.mxu1 }
 0x1b9   :  { %v305_v38 = vadd.f32 %v304_v37, %v1177_v6 }
 0x1ba   :  { %v948_v39 = vpop.f32.mrf.mxu1 }
 0x1bb   :  { %v312_v40 = vadd.f32 %v311_v36, %v305_v38  ;;  %v764_v36 = vsub.s32 7, %v1179_v9 }
 0x1bd   :  { %v313_v41 = vmax.f32 %v312_v40, 0.0  ;;  %v765_v37 = vrot.slane %v1182_v11, %v764_v36 }
 0x1bf   :  { %982 = vmatmul.mubr.f32.vlgmr.msra.gmra.mxu0 %v313_v41 }
 0x1c0   :  { %1035 = vmatprep.mubr.msk.f32.mxu0 %vm1103_vm0, %v1102_v0  ;;  %1020 = vmatpush3.msra.mxu0 %v503_v45 }
 0x1c1   :  { %1021 = vmatprep.subr.mxu0 %v1102_v0 }
 0x1c2   :  { %1022 = vmatpush3.msra.mxu0 %v502_v46 }
 0x1c3   :  { %1023 = vmatprep.subr.mxu0 %v1102_v0 }
 0x1c4   :  { %1024 = vmatpush3.msra.mxu0 %v501_v47 }
 0x1c5   :  { %1025 = vmatprep.subr.mxu0 %v1102_v0 }
 0x1c6   :  { %1026 = vmatpush3.msra.mxu0 %v500_v48 }
 0x1c7   :  { %1027 = vmatprep.subr.mxu0 %v1102_v0 }
 0x1c8   :  { %1028 = vmatpush3.msra.mxu0 %v499_v49 }
 0x1c9   :  { %1029 = vmatprep.subr.mxu0 %v1102_v0 }
 0x1ca   :  { %1030 = vmatpush3.msra.mxu0 %v498_v56 }
 0x1cb   :  { %1031 = vmatprep.subr.mxu0 %v1102_v0 }
 0x1cc   :  { %1032 = vmatpush3.msra.mxu0 %v497_v57 }
 0x1cd   :  { %1033 = vmatprep.subr.mxu0 %v1102_v0 }
 0x1ce   :  { %1034 = vmatpush3.msra.mxu0 %v496_v58 }
 0x1cf   :  { %1057 = vmatprep.subr.mxu0 %v1102_v0 }
 0x27f   :  { %v400_v52 = vpop.f32.mrf.mxu0 }
 0x280   :  { %v401_v53 = vadd.f32 %v400_v52, %v333_v51 }
 0x281   :  { %v983_v54 = vpop.f32.mrf.mxu0 }
 0x282   :  { %v404_v55 = vmax.f32 %v401_v53, 0.0 }
 0x284   :  { %1017 = vmatmul.mubr.f32.vlgmr.msra.gmra.mxu1 %v404_v55 }
 0x285   :  { %1054 = vmatprep.mubr.msk.f32.mxu1 %vm1103_vm0, %v1102_v0  ;;  %1039 = vmatpush3.msra.mxu1 %v590_v59 }
 0x286   :  { %1040 = vmatprep.subr.mxu1 %v1102_v0 }
 0x287   :  { %1041 = vmatpush3.msra.mxu1 %v589_v60 }
 0x288   :  { %1042 = vmatprep.subr.mxu1 %v1102_v0 }
 0x289   :  { %1043 = vmatpush3.msra.mxu1 %v588_v61 }
 0x28a   :  { %1044 = vmatprep.subr.mxu1 %v1102_v0 }
 0x28b   :  { %1045 = vmatpush3.msra.mxu1 %v587_v62 }
 0x28c   :  { %1046 = vmatprep.subr.mxu1 %v1102_v0 }
 0x28d   :  { %1047 = vmatpush3.msra.mxu1 %v586_v63 }
 0x28e   :  { %1048 = vmatprep.subr.mxu1 %v1102_v0 }
 0x28f   :  { %1049 = vmatpush3.msra.mxu1 %v585_v7 }
 0x290   :  { %1050 = vmatprep.subr.mxu1 %v1102_v0 }
 0x291   :  { %1051 = vmatpush3.msra.mxu1 %v584_v8 }
 0x292   :  { %1052 = vmatprep.subr.mxu1 %v1102_v0 }
 0x293   :  { %1053 = vmatpush3.msra.mxu1 %v583_v10 }
 0x344   :  { %v491_v3 = vpop.f32.mrf.mxu1 }
 0x345   :  { %v492_v4 = vadd.f32 %v491_v3, %v424_v2 }
 0x346   :  { %v1018_v5 = vpop.f32.mrf.mxu1 }
 0x347   :  { %v495_v6 = vmax.f32 %v492_v4, 0.0 }
 0x349   :  { %1036 = vmatmul.mubr.msk.f32.vlgmr.msra.gmra.mxu0 %vm508_vm3, %v495_v6 }
 0x34a   :  { %1065 = vmatprep.mubr.msk.f32.mxu0 %vm1103_vm0, %v1102_v0  ;;  %1058 = vmatpush3.msra.mxu0 %v672_v12 }
 0x34b   :  { %1059 = vmatprep.subr.mxu0 %v1102_v0 }
 0x34c   :  { %1060 = vmatpush3.msra.mxu0 %v671_v19 }
 0x34d   :  { %1061 = vmatprep.subr.mxu0 %v1102_v0 }
 0x34e   :  { %1062 = vmatpush3.msra.mxu0 %v670_v20 }
 0x34f   :  { %1063 = vmatprep.subr.mxu0 %v1102_v0  ;;  %v785_v0 = vld [vmem:[#allocation2 + $0x348] ss:$0 sm:$0xff] }
 0x350   :  { %1064 = vmatpush3.msra.mxu0 %v669_v21 }
 0x409   :  { %v578_v15 = vpop.f32.mrf.mxu0 }
 0x40a   :  { %v579_v16 = vadd.f32 %v578_v15, %v507_v14 }
 0x40b   :  { %v1037_v17 = vpop.f32.mrf.mxu0 }
 0x40c   :  { %v582_v18 = vmax.f32 %v579_v16, 0.0 }
 0x40e   :  { %1055 = vmatmul.mubr.msk.f32.vlgmr.msra.gmra.mxu1 %vm508_vm3, %v582_v18 }
 0x4ce   :  { %v664_v24 = vpop.f32.mrf.mxu1 }
 0x4cf   :  { %v665_v25 = vadd.f32 %v664_v24, %v594_v23 }
 0x4d0   :  { %v1056_v26 = vpop.f32.mrf.mxu1 }
 0x4d1   :  { %v668_v27 = vmax.f32 %v665_v25, 0.0 }
 0x4d3   :  { %1066 = vmatmul.mubr.msk.f32.vlgmr.msra.gmra.mxu0 %vm677_vm4, %v668_v27 }
 0x593   :  { %v747_v30 = vpop.f32.mrf.mxu0 }
 0x594   :  { %v748_v31 = vadd.f32 %v747_v30, %v676_v29 }
 0x595   :  { %v1067_v32 = vpop.f32.mrf.mxu0 }
 0x596   :  { %v751_v33 = vmax.f32 %v748_v31, 0.0 }
 0x598   :  { %v757_v34 = vmul.f32 %v785_v0, %v751_v33 }
 0x59a   :  { %v759_v35 = vsel %vm758_vm5, %v757_v34, 0.0 }
 0x59b   :  { %760 = vadd.xlane.f32.xlu0 %v759_v35 }
 0x624   :  { %v761_v38 = vpop.xlane.xlu0 %760 }
 0x625   :  { %v766_v39 = vadd.f32 %v765_v37, %v761_v38 }
 0x627   :  { %v767_v40 = vsub.f32 0.0, %v766_v39 }
 0x629   :  { %v768_v41 = vmul.f32 1.442695, %v767_v40 }
 0x62b   :  { %1073 = vpow2.f32 %v768_v41 }
 0x638   :  { %v1074_v42 = vpop.eup %1073 }
 0x639   :  { %v770_v43 = vadd.f32 1.0, %v1074_v42 }
 0x63b   :  { %1075 = vrcp.f32 %v770_v43 }
 0x648   :  { %v1076_v44 = vpop.eup %1075 }
 0x649   :  { %774 = vst.msk [vmem:[%s1254_s3] sm:$0xff] %vm773_vm6, %v1076_v44 }
 0x64a   :  { %779 = vsyncpa [#allocation3], 1 }

</bundles_post_ra>
